<compile_context>
chip_gen: v5e
topology: v5e:2x2
jax: 0.10.0
libtpu: 0.0.40
codegen_flags: <defaults>
</compile_context>

<pallas_src>
import math
import functools

import numpy as np
import jax
import jax.numpy as jnp
from jax.experimental import pallas as pl
from jax.experimental.pallas import tpu as pltpu

MM_DTYPE = jnp.bfloat16    # MXU input / inter-layer activation dtype (accumulation stays f32)
MASK_DTYPE = jnp.bfloat16  # TODO(synk): pack adjacency masks to int8 (or 1 bit/edge) to further cut HBM traffic (largest win on v5e).
KV_TILE = 512              # KV-axis tile for large graphs (multiple of 128 lanes)


# ----------------------------------------------------------------------------
# hardware-aware sizing
# ----------------------------------------------------------------------------
def _hardware_config():
    """VMEM capacity -> (row-tile target, vmem_limit_bytes).
    512-row tiles / ~96 MiB on 128 MiB parts (v5e/v6e), 256 / ~48 MiB on 64 MiB v7x."""
    cap = 64 * 1024 * 1024
    try:
        get_info = getattr(pltpu, "get_tpu_info", None)
        if get_info is not None:
            cap = int(getattr(get_info(), "vmem_capacity_bytes", cap) or cap)
    except Exception:
        pass
    row_target = 512 if cap >= 100 * 1024 * 1024 else 256
    vmem_limit = int(cap * 3 // 4)
    return row_target, vmem_limit


def _round_up(x, m):
    return ((x + m - 1) // m) * m


def _plan_ntype(n, row_target, kv_tile=KV_TILE):
    """Row tile (>=2 grid steps after padding, multiple of 16) + KV tile
    (128-lane-aligned multiple, or the full padded source axis for small graphs)."""
    if n >= 2 * row_target:
        tm = row_target
        n_pad = _round_up(n, max(tm, kv_tile))
        tk = kv_tile
    else:
        tm = min(row_target, max(16, _round_up(-(-n // 2), 16)))
        n_pad = max(2 * tm, _round_up(n, tm))
        tk = n_pad            # whole (padded) source axis is a single KV block
    return tm, tk, n_pad


def build_graph_plan(masks, num_nodes, ntypes, etypes, row_target):
    """Pad node counts, pad masks, and build per-relation block-CSR tables
    (per-row-tile nonzero-KV-block counts + block indices) for scalar prefetch."""
    plan = {"ntype": {}, "rel": {}}
    for nt in ntypes:
        tm, tk, n_pad = _plan_ntype(num_nodes[nt], row_target)
        plan["ntype"][nt] = dict(tm=tm, tk=tk, n_pad=n_pad)

    for triple in etypes:
        s, e, d = triple
        pd_, ps_ = plan["ntype"][d], plan["ntype"][s]
        nd, ns = num_nodes[d], num_nodes[s]
        nd_pad, ns_pad = pd_["n_pad"], ps_["n_pad"]
        tm, tk = pd_["tm"], ps_["tk"]

        m = np.zeros((nd_pad, ns_pad), np.float32)
        m[:nd, :ns] = np.asarray(masks[triple], dtype=np.float32)

        gr, gb_full = nd_pad // tm, ns_pad // tk
        blk_any = m.reshape(gr, tm, gb_full, tk).max(axis=(1, 3)) > 0.0   # (gr, gb_full)
        counts = blk_any.sum(axis=1).astype(np.int32)
        num_blocks = max(1, int(counts.max()))
        idx = np.zeros((gr, num_blocks), np.int32)
        for i in range(gr):
            nz = np.flatnonzero(blk_any[i])
            idx[i, :nz.size] = nz

        plan["rel"][triple] = dict(
            mask=jnp.asarray(m, MASK_DTYPE),
            counts=jnp.asarray(counts, jnp.int32),
            blk_idx=jnp.asarray(idx.reshape(-1), jnp.int32),   # flat (gr*num_blocks,) SMEM table
            num_blocks=num_blocks,
            tk=tk)
    return plan


def _pad_rows(x, n_pad):
    n = x.shape[0]
    if n == n_pad:
        return x
    return jnp.pad(x, ((0, n_pad - n), (0, 0)))


# ----------------------------------------------------------------------------
# misc numerics helpers
# ----------------------------------------------------------------------------
def _erf_f32(x):
    """Abramowitz & Stegun 7.1.26 erf approximation (|err| < 1.5e-7, f32).
    Only exp/mul/add/recip -> the exact-erf GELU lives in the matmul epilogue."""
    a1, a2, a3, a4, a5 = 0.254829592, -0.284496736, 1.421413741, -1.453152027, 1.061405429
    p = 0.3275911
    sgn = jnp.where(x < 0.0, -1.0, 1.0)
    ax = jnp.abs(x)
    t = 1.0 / (1.0 + p * ax)
    poly = ((((a5 * t + a4) * t + a3) * t + a2) * t + a1) * t
    return sgn * (1.0 - poly * jnp.exp(-ax * ax))


def _block_diag(blocks):
    """(H, dk, dk) -> (H*dk, H*dk) block diagonal (host-side, once at init).
    TODO(synk): for realistic hidden dims, zero-pad each dk block to 128 lanes so every
    per-head slice in the attention kernel is lane-aligned and the MXU contraction depth grows."""
    h, dk, _ = blocks.shape
    out = jnp.zeros((h * dk, h * dk), jnp.float32)
    for i in range(h):
        out = out.at[i * dk:(i + 1) * dk, i * dk:(i + 1) * dk].set(blocks[i])
    return out


# ----------------------------------------------------------------------------
# Kernel 1: row x Dout tiled linear (+ optional fused exact-GELU epilogue)
# ----------------------------------------------------------------------------
def _linear_kernel(x_ref, w_ref, b_ref, o_ref, *, act):
    x = x_ref[...].astype(MM_DTYPE)
    acc = jnp.dot(x, w_ref[...], preferred_element_type=jnp.float32) + b_ref[...]
    if act == "gelu":
        acc = 0.5 * acc * (1.0 + _erf_f32(acc * 0.7071067811865476))
    o_ref[...] = acc.astype(o_ref.dtype)


def pallas_linear(x, w, b, *, row_tile, act=None, out_dtype=MM_DTYPE, vmem_limit=None):
    """x @ w + b, row- and Dout-tiled, optional fused GELU.  w is (Din, Dout) bf16."""
    n, din = x.shape
    dout = w.shape[1]
    tm = row_tile
    assert n % tm == 0, (n, tm)
    tn = dout if (dout <= 512 or dout % 512 != 0) else 512
    kern = functools.partial(_linear_kernel, act=act)
    # NOTE: constant-index blocks (w, b) are candidates for single-buffering
    # (pipeline_mode=pl.Buffered(1)) to save VMEM on v7x.
    # TODO(synk): add a K grid axis + f32 VMEM accumulator for very large Din.
    return pl.pallas_call(
        kern,
        out_shape=jax.ShapeDtypeStruct((n, dout), out_dtype),
        grid=(n // tm, dout // tn),
        in_specs=[pl.BlockSpec((tm, din), lambda i, j: (i, 0)),
                  pl.BlockSpec((din, tn), lambda i, j: (0, j)),
                  pl.BlockSpec((1, tn), lambda i, j: (0, j))],
        out_specs=pl.BlockSpec((tm, tn), lambda i, j: (i, j)),
        compiler_params=pltpu.CompilerParams(
            dimension_semantics=("parallel", "parallel"),
            vmem_limit_bytes=vmem_limit),
    )(x, w, b.reshape(1, dout))


# ----------------------------------------------------------------------------
# Kernel 2: block-sparse masked multi-head attention (online softmax over KV blocks)
# ----------------------------------------------------------------------------
def _attn_kernel(counts_ref, idx_ref, q_ref, kt_ref, v_ref, mask_ref, o_ref,
                 m_sc, l_sc, acc_sc, *, num_heads):
    hidden = q_ref.shape[-1]
    dk = hidden // num_heads
    i = pl.program_id(0)
    j = pl.program_id(1)

    @pl.when(j == 0)
    def _():
        m_sc[...] = jnp.full(m_sc.shape, -1e30, m_sc.dtype)
        l_sc[...] = jnp.zeros(l_sc.shape, l_sc.dtype)
        acc_sc[...] = jnp.zeros(acc_sc.shape, acc_sc.dtype)

    @pl.when(j < counts_ref[i])                         # skip KV blocks with no edges
    def _():
        q = q_ref[...]                                  # (tm, hidden)  bf16
        kt = kt_ref[...]                                # (hidden, tk)  bf16  (pre-transposed K)
        v = v_ref[...]                                  # (tk, hidden)  bf16
        mask_f = mask_ref[...].astype(jnp.float32)      # (tm, tk)  hoisted out of the head loop
        bias = (mask_f - 1.0) * 1e30                    # 0 on edges, -1e30 elsewhere
        for h in range(num_heads):                      # static unroll, H small
            qh = q[:, h * dk:(h + 1) * dk]
            kth = kt[h * dk:(h + 1) * dk, :]
            # scores already include w_att and mu/sqrt(dk) via the fused k projection
            s = jnp.dot(qh, kth, preferred_element_type=jnp.float32) + bias
            m_prev = m_sc[h]                            # (tm, 1)
            m_new = jnp.maximum(m_prev, jnp.max(s, axis=-1, keepdims=True))
            alpha = jnp.exp(m_prev - m_new)
            p = jnp.exp(s - m_new) * mask_f             # exactly 0 on non-edges
            l_sc[h] = alpha * l_sc[h] + jnp.sum(p, axis=-1, keepdims=True)
            m_sc[h] = m_new
            acc_sc[h] = alpha * acc_sc[h] + jnp.dot(
                p.astype(MM_DTYPE), v[:, h * dk:(h + 1) * dk],
                preferred_element_type=jnp.float32)

    @pl.when(j == pl.num_programs(1) - 1)
    def _():
        outs = []
        for h in range(num_heads):
            denom = jnp.where(l_sc[h] > 0.0, l_sc[h], 1.0)   # 0-in-degree rows stay exactly 0
            outs.append(acc_sc[h] / denom)
        # single lane-dense (tm, hidden) store per row tile
        o_ref[...] = jnp.concatenate(outs, axis=-1).astype(o_ref.dtype)


def pallas_hgt_attention(q, kt, v, mask, counts, blk_idx, *, num_heads, row_tile,
                         kv_tile, num_blocks, vmem_limit=None):
    """q:(Nd,hidden) bf16, kt:(hidden,Ns) bf16, v:(Ns,hidden) bf16, mask:(Nd,Ns) bf16,
    counts:(gr,) i32, blk_idx:(gr*num_blocks,) i32 -> (Nd,hidden) bf16."""
    nd_pad, hidden = q.shape
    tm, tk, gb = row_tile, kv_tile, num_blocks
    gr = nd_pad // tm
    dk = hidden // num_heads

    def q_map(i, j, cnt, idx):
        return (i, 0)

    def kt_map(i, j, cnt, idx):
        return (0, idx[i * gb + j])

    def v_map(i, j, cnt, idx):
        return (idx[i * gb + j], 0)

    def mask_map(i, j, cnt, idx):
        return (i, idx[i * gb + j])

    def out_map(i, j, cnt, idx):
        return (i, 0)

    kern = functools.partial(_attn_kernel, num_heads=num_heads)
    # TODO(synk): batch relations sharing a destination type into one call via an extra
    # relation grid axis to amortize launch + pipeline warm-up at small N.
    return pl.pallas_call(
        kern,
        out_shape=jax.ShapeDtypeStruct((nd_pad, hidden), MM_DTYPE),
        grid_spec=pltpu.PrefetchScalarGridSpec(
            num_scalar_prefetch=2,
            grid=(gr, gb),
            in_specs=[pl.BlockSpec((tm, hidden), q_map),
                      pl.BlockSpec((hidden, tk), kt_map),
                      pl.BlockSpec((tk, hidden), v_map),
                      pl.BlockSpec((tm, tk), mask_map)],
            out_specs=pl.BlockSpec((tm, hidden), out_map),
            scratch_shapes=[pltpu.VMEM((num_heads, tm, 1), jnp.float32),   # running max
                            pltpu.VMEM((num_heads, tm, 1), jnp.float32),   # running sum
                            pltpu.VMEM((num_heads, tm, dk), jnp.float32)]),  # acc
        compiler_params=pltpu.CompilerParams(
            dimension_semantics=("parallel", "arbitrary"),
            vmem_limit_bytes=vmem_limit),
    )(counts, blk_idx, q, kt, v, mask)


# ----------------------------------------------------------------------------
# Kernel 3: fused a_linear + skip-gate + LayerNorm (row-tiled)
# ----------------------------------------------------------------------------
def _a_skip_ln_kernel(h_ref, feat_ref, w_ref, b_ref, gamma_ref, beta_ref, alpha_ref,
                      o_ref, *, use_norm, eps):
    trans = jnp.dot(h_ref[...].astype(MM_DTYPE), w_ref[...],
                    preferred_element_type=jnp.float32) + b_ref[...]
    a = alpha_ref[...]                                   # (1, 1) broadcasts
    x = a * trans + (1.0 - a) * feat_ref[...].astype(jnp.float32)   # dropout == identity (eval)
    if use_norm:
        mean = jnp.mean(x, axis=-1, keepdims=True)
        xc = x - mean
        var = jnp.mean(xc * xc, axis=-1, keepdims=True)  # biased variance (PyTorch LN)
        x = xc * jax.lax.rsqrt(var + eps)
        x = x * gamma_ref[...] + beta_ref[...]
    o_ref[...] = x.astype(o_ref.dtype)


def pallas_a_linear_skip_ln(h, feat, w, b, alpha, gamma, beta, *, use_norm, row_tile,
                            eps=1e-5, vmem_limit=None):
    n, hidden = h.shape
    tm = row_tile
    kern = functools.partial(_a_skip_ln_kernel, use_norm=use_norm, eps=eps)
    return pl.pallas_call(
        kern,
        out_shape=jax.ShapeDtypeStruct((n, hidden), MM_DTYPE),
        grid=(n // tm,),
        in_specs=[pl.BlockSpec((tm, hidden), lambda i: (i, 0)),       # aggregated attention out
                  pl.BlockSpec((tm, hidden), lambda i: (i, 0)),       # skip features
                  pl.BlockSpec((hidden, hidden), lambda i: (0, 0)),   # a_linear weight (bf16)
                  pl.BlockSpec((1, hidden), lambda i: (0, 0)),        # a_linear bias
                  pl.BlockSpec((1, hidden), lambda i: (0, 0)),        # LN gamma
                  pl.BlockSpec((1, hidden), lambda i: (0, 0)),        # LN beta
                  pl.BlockSpec((1, 1), lambda i: (0, 0))],            # alpha = sigmoid(skip)
        out_specs=pl.BlockSpec((tm, hidden), lambda i: (i, 0)),
        compiler_params=pltpu.CompilerParams(
            dimension_semantics=("parallel",),
            vmem_limit_bytes=vmem_limit),
    )(h, feat, w, b.reshape(1, hidden), gamma.reshape(1, hidden), beta.reshape(1, hidden),
      alpha.reshape(1, 1))


# ----------------------------------------------------------------------------
# Parameter initialization (shapes per HGT.__init__) + host-side weight fusion
# ----------------------------------------------------------------------------
def _init_linear(key, din, dout):
    k1, k2 = jax.random.split(key)
    bound = 1.0 / math.sqrt(din)
    w = jax.random.uniform(k1, (din, dout), jnp.float32, -bound, bound)
    b = jax.random.uniform(k2, (dout,), jnp.float32, -bound, bound)
    return w, b


def _xavier_uniform(key, shape):
    rf = 1
    for s in shape[2:]:
        rf *= s
    fan_in, fan_out = shape[1] * rf, shape[0] * rf
    bound = math.sqrt(6.0 / (fan_in + fan_out))
    return jax.random.uniform(key, shape, jnp.float32, -bound, bound)


class _KeyGen:
    def __init__(self, key):
        self._key = key
        self._i = 0

    def __call__(self):
        self._i += 1
        return jax.random.fold_in(self._key, self._i)


def init_hgt_params(key, in_dims, hidden_dim, num_heads, ntypes, etypes, num_layers):
    kg = _KeyGen(key)
    dk = hidden_dim // num_heads
    params = {"adapt": {}, "layers": []}
    for nt in ntypes:
        w, b = _init_linear(kg(), in_dims[nt], hidden_dim)
        params["adapt"][nt] = (w.astype(MM_DTYPE), b)

    for _ in range(num_layers):
        k_lin = {nt: _init_linear(kg(), hidden_dim, hidden_dim) for nt in ntypes}
        q_lin = {nt: _init_linear(kg(), hidden_dim, hidden_dim) for nt in ntypes}
        v_lin = {nt: _init_linear(kg(), hidden_dim, hidden_dim) for nt in ntypes}
        w_att = {e: _xavier_uniform(kg(), (num_heads, dk, dk)) for _, e, _ in etypes}
        w_msg = {e: _xavier_uniform(kg(), (num_heads, dk, dk)) for _, e, _ in etypes}
        mu = {e: jnp.ones((num_heads,), jnp.float32) for _, e, _ in etypes}
        a_lin = {nt: _init_linear(kg(), hidden_dim, hidden_dim) for nt in ntypes}

        # Host-side fusion:
        #   k' = k_linear(x) @ blockdiag(w_att * mu/sqrt(dk))  (== einsum 'nhi,hij->nhj' * mu/sqrt(dk))
        #   v' = v_linear(x) @ blockdiag(w_msg)
        # -> ONE (hidden, 2*hidden) projection per relation, further batched per source type.
        kv_fused = {}
        for (s, e, d) in etypes:
            att_bd = _block_diag(w_att[e] * (mu[e] / math.sqrt(dk))[:, None, None])
            msg_bd = _block_diag(w_msg[e])
            wk, bk = k_lin[s]
            wv, bv = v_lin[s]
            w_f = jnp.concatenate([wk @ att_bd, wv @ msg_bd], axis=1)   # (hidden, 2*hidden)
            b_f = jnp.concatenate([bk @ att_bd, bv @ msg_bd], axis=0)   # (2*hidden,)
            kv_fused[(s, e, d)] = (w_f, b_f)

        kv_by_src = {}
        for s_nt in sorted({s for s, _, _ in etypes}):
            rels = [t for t in etypes if t[0] == s_nt]
            wb = jnp.concatenate([kv_fused[t][0] for t in rels], axis=1).astype(MM_DTYPE)
            bb = jnp.concatenate([kv_fused[t][1] for t in rels], axis=0)
            kv_by_src[s_nt] = (wb, bb, rels)

        lp = {
            "q": {nt: (q_lin[nt][0].astype(MM_DTYPE), q_lin[nt][1]) for nt in ntypes},
            "kv_by_src": kv_by_src,
            "a": {nt: (a_lin[nt][0].astype(MM_DTYPE), a_lin[nt][1]) for nt in ntypes},
            "skip": {nt: jnp.ones((1,), jnp.float32) for nt in ntypes},
            "norm": {nt: (jnp.ones((hidden_dim,), jnp.float32),
                          jnp.zeros((hidden_dim,), jnp.float32)) for nt in ntypes},
        }
        params["layers"].append(lp)
    # NOTE: HGT.__init__ also builds `self.predict`, but HGT.forward never applies it,
    # so it is intentionally not created here (forward returns the per-ntype dict, 0).
    return params


# ----------------------------------------------------------------------------
# Forward pass (HGT.forward semantics, eval mode: dropout == identity)
# ----------------------------------------------------------------------------
def hgt_layer_forward(lp, plan, feats, ntypes, etypes, num_heads, use_norm, vmem_limit):
    nt_plan = plan["ntype"]
    hidden = next(iter(feats.values())).shape[1]

    # q projection once per destination type, reused by every relation targeting it
    dst_types = sorted({d for _, _, d in etypes})
    q = {}
    for nt in dst_types:
        wq, bq = lp["q"][nt]
        q[nt] = pallas_linear(feats[nt], wq, bq, row_tile=nt_plan[nt]["tm"],
                              out_dtype=MM_DTYPE, vmem_limit=vmem_limit)

    # fused k|v projections (w_att*mu, w_msg folded in), batched across relations per source type
    kv = {}
    for s_nt, (wb, bb, rels) in lp["kv_by_src"].items():
        big = pallas_linear(feats[s_nt], wb, bb, row_tile=nt_plan[s_nt]["tm"],
                            out_dtype=MM_DTYPE, vmem_limit=vmem_limit)
        for r_i, triple in enumerate(rels):
            blk = big[:, r_i * 2 * hidden:(r_i + 1) * 2 * hidden]
            # K stored pre-transposed so in-kernel QK^T needs no per-head XLU transpose
            kv[triple] = (blk[:, :hidden].T, blk[:, hidden:])

    rel_out = {nt: [] for nt in ntypes}
    for triple in etypes:
        s, e, d = triple
        kt, v = kv[triple]
        rp = plan["rel"][triple]
        rel_out[d].append(pallas_hgt_attention(
            q[d], kt, v, rp["mask"], rp["counts"], rp["blk_idx"],
            num_heads=num_heads, row_tile=nt_plan[d]["tm"], kv_tile=rp["tk"],
            num_blocks=rp["num_blocks"], vmem_limit=vmem_limit))

    out_feats = {}
    for nt in ntypes:
        if not rel_out[nt]:
            continue
        outs = rel_out[nt]
        # HeteroGraphConv(..., 'mean') aggregation across relations targeting nt (tiny plain-JAX glue)
        if len(outs) == 1:
            h = outs[0]
        else:
            h = (sum(o.astype(jnp.float32) for o in outs) * (1.0 / len(outs))).astype(MM_DTYPE)
        wa, ba = lp["a"][nt]
        alpha = jax.nn.sigmoid(lp["skip"][nt])
        gamma, beta = lp["norm"][nt]
        out_feats[nt] = pallas_a_linear_skip_ln(
            h, feats[nt], wa, ba, alpha, gamma, beta, use_norm=use_norm,
            row_tile=nt_plan[nt]["tm"], vmem_limit=vmem_limit)
    return out_feats


def hgt_forward(params, plan, feats_x, ntypes, etypes, num_heads, num_nodes,
                use_norm=True, vmem_limit=None):
    hs = {}
    for nt in ntypes:
        w, b = params["adapt"][nt]
        x = _pad_rows(feats_x[nt], plan["ntype"][nt]["n_pad"])
        hs[nt] = pallas_linear(x, w, b, row_tile=plan["ntype"][nt]["tm"],
                               act="gelu", out_dtype=MM_DTYPE, vmem_limit=vmem_limit)
    for lp in params["layers"]:
        hs = hgt_layer_forward(lp, plan, hs, ntypes, etypes, num_heads, use_norm, vmem_limit)
    out = {nt: hs[nt][:num_nodes[nt]] for nt in ntypes if nt in hs}
    return out, 0


# ----------------------------------------------------------------------------
if __name__ == "__main__":
    key = jax.random.PRNGKey(0)

    ntypes = ["paper", "author"]
    etypes = [("author", "writes", "paper"),
              ("paper", "written_by", "author"),
              ("paper", "cites", "paper")]
    num_nodes = {"paper": 16, "author": 8}
    in_dims = {"paper": 12, "author": 10}
    hidden_dim = 32
    num_heads = 4          # d_k = 8
    num_layers = 2

    params = init_hgt_params(jax.random.fold_in(key, 0), in_dims, hidden_dim,
                             num_heads, ntypes, etypes, num_layers)

    # node input features  g.nodes[ntype].data['x']
    feats = {
        nt: jax.random.normal(jax.random.fold_in(key, 1000 + i),
                              (num_nodes[nt], in_dims[nt]), jnp.float32)
        for i, nt in enumerate(ntypes)
    }

    # dense adjacency masks per canonical edge type: (N_dst, N_src) in {0,1}
    masks = {}
    for i, (s, e, d) in enumerate(etypes):
        mk = jax.random.fold_in(key, 2000 + i)
        masks[(s, e, d)] = (
            jax.random.uniform(mk, (num_nodes[d], num_nodes[s])) < 0.4
        ).astype(jnp.float32)

    row_target, vmem_limit = _hardware_config()
    plan = build_graph_plan(masks, num_nodes, ntypes, etypes, row_target)

    out, aux = hgt_forward(params, plan, feats, ntypes, etypes, num_heads, num_nodes,
                           use_norm=True, vmem_limit=vmem_limit)

    for nt in ntypes:
        jax.block_until_ready(out[nt])
        assert out[nt].shape == (num_nodes[nt], hidden_dim), out[nt].shape
        assert bool(jnp.all(jnp.isfinite(out[nt].astype(jnp.float32))))
    assert aux == 0

    print("KERNEL_OK")
</pallas_src>

<mosaic_0001>
module attributes {stable_mosaic.version = 11 : i64} {
  func.func @_linear_kernel(%arg0: i32, %arg1: i32, %arg2: memref<16x12xf32, #tpu.memory_space<vmem>>, %arg3: memref<12x32xbf16, #tpu.memory_space<vmem>>, %arg4: memref<1x32xf32, #tpu.memory_space<vmem>>, %arg5: memref<16x32xbf16, #tpu.memory_space<vmem>>) attributes {dimension_semantics = [#tpu.dimension_semantics<parallel>, #tpu.dimension_semantics<parallel>], iteration_bounds = array<i64: 2, 1>, scalar_prefetch = 0 : i64, scratch_operands = 0 : i64, tpu.core_type = #tpu.core_type<tc>, window_params = [{transform_indices = @transform_0, window_bounds = array<i64: 16, 12>}, {transform_indices = @transform_1, window_bounds = array<i64: 12, 32>}, {transform_indices = @transform_2, window_bounds = array<i64: 1, 32>}, {transform_indices = @transform_3, window_bounds = array<i64: 16, 32>}]} {
    %c0 = arith.constant 0 : index
    %c0_0 = arith.constant 0 : index
    %0 = vector.load %arg2[%c0, %c0_0] : memref<16x12xf32, #tpu.memory_space<vmem>>, vector<16x12xf32>
    %1 = arith.truncf %0 : vector<16x12xf32> to vector<16x12xbf16>
    %c0_1 = arith.constant 0 : index
    %c0_2 = arith.constant 0 : index
    %2 = vector.load %arg3[%c0_1, %c0_2] : memref<12x32xbf16, #tpu.memory_space<vmem>>, vector<12x32xbf16>
    %cst = arith.constant dense<0.000000e+00> : vector<16x32xf32>
    %3 = tpu.matmul %1, %2, %cst {dimension_numbers = #tpu.dot_dimension_numbers<[1], [0], [0], [1], [0, 0, 1, 1], [], []>} : vector<16x12xbf16>, vector<12x32xbf16>, vector<16x32xf32> -> vector<16x32xf32>
    %c0_3 = arith.constant 0 : index
    %c0_4 = arith.constant 0 : index
    %4 = vector.load %arg4[%c0_3, %c0_4] : memref<1x32xf32, #tpu.memory_space<vmem>>, vector<1x32xf32>
    %5 = vector.broadcast %4 : vector<1x32xf32> to vector<16x32xf32>
    %6 = arith.addf %3, %5 : vector<16x32xf32>
    %cst_5 = arith.constant 5.000000e-01 : f32
    %7 = vector.broadcast %cst_5 : f32 to vector<16x32xf32>
    %8 = arith.mulf %7, %6 : vector<16x32xf32>
    %cst_6 = arith.constant 0.707106769 : f32
    %9 = vector.broadcast %cst_6 : f32 to vector<16x32xf32>
    %10 = arith.mulf %6, %9 : vector<16x32xf32>
    %cst_7 = arith.constant 0.000000e+00 : f32
    %11 = vector.broadcast %cst_7 : f32 to vector<16x32xf32>
    %12 = arith.cmpf olt, %10, %11 : vector<16x32xf32>
    %cst_8 = arith.constant -1.000000e+00 : f32
    %cst_9 = arith.constant 1.000000e+00 : f32
    %13 = vector.broadcast %cst_8 : f32 to vector<16x32xf32>
    %14 = vector.broadcast %cst_9 : f32 to vector<16x32xf32>
    %15 = arith.select %12, %13, %14 : vector<16x32xi1>, vector<16x32xf32>
    %16 = math.absf %10 : vector<16x32xf32>
    %cst_10 = arith.constant 0.327591091 : f32
    %17 = vector.broadcast %cst_10 : f32 to vector<16x32xf32>
    %18 = arith.mulf %17, %16 : vector<16x32xf32>
    %cst_11 = arith.constant 1.000000e+00 : f32
    %19 = vector.broadcast %cst_11 : f32 to vector<16x32xf32>
    %20 = arith.addf %19, %18 : vector<16x32xf32>
    %cst_12 = arith.constant 1.000000e+00 : f32
    %21 = vector.broadcast %cst_12 : f32 to vector<16x32xf32>
    %22 = arith.divf %21, %20 : vector<16x32xf32>
    %cst_13 = arith.constant 1.06140542 : f32
    %23 = vector.broadcast %cst_13 : f32 to vector<16x32xf32>
    %24 = arith.mulf %23, %22 : vector<16x32xf32>
    %cst_14 = arith.constant -1.45315206 : f32
    %25 = vector.broadcast %cst_14 : f32 to vector<16x32xf32>
    %26 = arith.addf %24, %25 : vector<16x32xf32>
    %27 = arith.mulf %26, %22 : vector<16x32xf32>
    %cst_15 = arith.constant 1.42141378 : f32
    %28 = vector.broadcast %cst_15 : f32 to vector<16x32xf32>
    %29 = arith.addf %27, %28 : vector<16x32xf32>
    %30 = arith.mulf %29, %22 : vector<16x32xf32>
    %cst_16 = arith.constant -0.284496725 : f32
    %31 = vector.broadcast %cst_16 : f32 to vector<16x32xf32>
    %32 = arith.addf %30, %31 : vector<16x32xf32>
    %33 = arith.mulf %32, %22 : vector<16x32xf32>
    %cst_17 = arith.constant 0.254829586 : f32
    %34 = vector.broadcast %cst_17 : f32 to vector<16x32xf32>
    %35 = arith.addf %33, %34 : vector<16x32xf32>
    %36 = arith.mulf %35, %22 : vector<16x32xf32>
    %cst_18 = arith.constant 0.000000e+00 : f32
    %37 = vector.broadcast %cst_18 : f32 to vector<16x32xf32>
    %38 = arith.subf %37, %16 : vector<16x32xf32>
    %39 = arith.mulf %38, %16 : vector<16x32xf32>
    %40 = math.exp %39 : vector<16x32xf32>
    %41 = arith.mulf %36, %40 : vector<16x32xf32>
    %cst_19 = arith.constant 1.000000e+00 : f32
    %42 = vector.broadcast %cst_19 : f32 to vector<16x32xf32>
    %43 = arith.subf %42, %41 : vector<16x32xf32>
    %44 = arith.mulf %15, %43 : vector<16x32xf32>
    %cst_20 = arith.constant 1.000000e+00 : f32
    %45 = vector.broadcast %cst_20 : f32 to vector<16x32xf32>
    %46 = arith.addf %45, %44 : vector<16x32xf32>
    %47 = arith.mulf %8, %46 : vector<16x32xf32>
    %48 = arith.truncf %47 : vector<16x32xf32> to vector<16x32xbf16>
    %c0_21 = arith.constant 0 : index
    %c0_22 = arith.constant 0 : index
    %49 = vector.load %arg5[%c0_21, %c0_22] : memref<16x32xbf16, #tpu.memory_space<vmem>>, vector<16x32xbf16>
    tpu.vector_store %arg5[%c0_21, %c0_22], %48 {strides = array<i32>} : memref<16x32xbf16, #tpu.memory_space<vmem>>, vector<16x32xbf16>,
    return
  }
  func.func @transform_0(%arg0: i32, %arg1: i32) -> (i32, i32) {
    %c0_i32 = arith.constant 0 : i32
    %c0_i32_0 = arith.constant 0 : i32
    return %arg0, %c0_i32 : i32, i32
  }
  func.func @transform_1(%arg0: i32, %arg1: i32) -> (i32, i32) {
    %c0_i32 = arith.constant 0 : i32
    %c0_i32_0 = arith.constant 0 : i32
    return %c0_i32, %arg1 : i32, i32
  }
  func.func @transform_2(%arg0: i32, %arg1: i32) -> (i32, i32) {
    %c0_i32 = arith.constant 0 : i32
    %c0_i32_0 = arith.constant 0 : i32
    return %c0_i32, %arg1 : i32, i32
  }
  func.func @transform_3(%arg0: i32, %arg1: i32) -> (i32, i32) {
    %c0_i32 = arith.constant 0 : i32
    return %arg0, %arg1 : i32, i32
  }
}

</mosaic_0001>

<bundles_post_ra>
// kernel: tpu_custom_call.1
= control target key start
LH: loop header
LB: loop body
LE: loop exit
PB: predicated region body
PF: predicated region fallthrough
CT: control target
= control target key end

     0   :  { %8 = vsyncpa [#allocation3], 0  ;;  %s774_s0 = inlined_call_operand.vmem [shape: f32[32,12], index: 0, kind: input, shape index: {}]   ;;  %s775_s1 = inlined_call_operand.vmem [shape: bf16[12,32], index: 1, kind: input, shape index: {}]   ;;  %s776_s2 = inlined_call_operand.vmem [shape: f32[1,32], index: 2, kind: input, shape index: {}]   ;;  %s777_s3 = inlined_call_operand.hbm [shape: bf16[32,32], index: 3, kind: output, shape index: {}]  }
   0x1   :  { %10 = vsyncpa [#allocation3 + $0x1], 0  ;;  %s647_s12 = smov 0   ;;  %s649_s13 = smov 0  }
   0x2   :  { %s651_s14 = smov 0   ;;  %s653_s15 = smov 0  }
   0x3   :  { %s655_s16 = smov 0   ;;  %s657_s17 = smov 0  }
   0x4 LB: > { %s455_s18 = sadd.s32 4294967295, %s622_s17   ;;  %s456_s19 = sadd.s32 4294967294, %s622_s17   ;;  %s622_s17 = sphi %s657_s17, %s16_s17   ;;  %s618_s16 = sphi %s655_s16, %s784_s16   ;;  %s614_s15 = sphi %s653_s15, %s783_s15   ;;  %s610_s14 = sphi %s651_s14, %s782_s14   ;;  %s606_s13 = sphi %s649_s13, %s781_s13   ;;  %s602_s12 = sphi %s647_s12, %s780_s12  }
   0x5   : > { %s28_s20 = sadd.s32 1, %s618_s16  ;;  %s115_s21 = sadd.s32 1, %s610_s14 }
   0x6   : > { %p30_p0 = scmp.ge.s32.totalorder %s28_s20, 2  ;;  %p125_p1 = scmp.ne.s32.totalorder %s610_s14, %s606_s13 }
   0x7   : > { %p126_p2 = scmp.eq.s32.totalorder %s455_s18, 1  ;;  %p131_p3 = scmp.ne.s32.totalorder %s606_s13, %s602_s12 }
   0x8   : > { %s786_s20 = smov (%p30_p0, %s28_s20), 0  ;;  %p132_p5 = scmp.eq.s32.totalorder %s456_s19, 1 }
   0x9   : > { %p687_p4 = por %p126_p2, %p125_p1  ;;  %s110_s23 = ssub.s32 %s618_s16, %s786_s20 }
   0xa   : > { %p461_p6 = scmp.ge.s32.totalorder %s622_s17, 1  ;;  %p113_p7 = scmp.eq.s32.totalorder %s110_s23, 0 }
   0xb   : > { %p694_p8 = por %p132_p5, %p131_p3  ;;  %p172_p9 = scmp.lt.s32.totalorder %s622_s17, 3 }
   0xc   : > { %s700_s25 = scalar_select %p113_p7, %s610_s14, %s115_s21  }
   0xd   : > { %p173_p10 = pnand %p461_p6, %p172_p9 }
   0xe   : > { %s463_s30 = sshll.u32 (!%p173_p10), %s614_s15, 1  ;;  %s200_s10 = sand.u32 (!%p173_p10), 1, %s606_s13  }
   0xf   : > { %176 = sbr.rel (%p173_p10) target bundleno = 222 (0xde), region = 32  ;;  %p204_p11 = scmp.lt.s32.totalorder (!%p173_p10), %s463_s30, 3 }
  0x10   : > { %s462_s11 = sshll.u32 (!%p173_p10), %s200_s10, 3  ;;  %s476_s18 = sshll.u32 (!%p173_p10), %s614_s15, 3 }
  0x11   : > { %s202_s19 = scalar_lea.vmem (!%p173_p10), [#allocation2], %s462_s11  ;;  %s352_s26 = scalar_lea.hbm (!%p173_p10), %s777_s3, %s476_s18 }
  0x12   : > { %s353_s27 = sshll.u32 (!%p173_p10), %s202_s19, 4  ;;  %s355_s28 = sshll.u32 (!%p173_p10), %s352_s26, 4  ;;  %s354_s27 = int_to_ptr.vmem [resolvable:$true] %s353_s27  ;;  %s356_s28 = int_to_ptr.hbm [resolvable:$true] %s355_s28 }
  0x13   : > { %s340_s15 = scalar_lea.sflag (!%p173_p10), [#allocation3], %s200_s10  ;;  %s558_s29 = sshra.s32 (!%p173_p10), %s356_s28, 4  ;;  %s559_s29 = int_to_ptr.hbm [resolvable:$true] %s558_s29 }
  0x14   : > { %v467_v0 = vld [vmem:[%s775_s1] sm:$0xf]  ;;  %v475_v1 = vld [vmem:[%s775_s1] sm:$0x30]  ;;  %vm236_vm0 = vcmask 1045504   ;;  %s788_s30 = smov (!%p204_p11, %s463_s30), 3  ;;  %p565_p1 = scmp.lt.s32.totalorder %s559_s29, %s777_s3 }
  0x15   : > { %v468_v2 = vor.u32 %v475_v1, %v467_v0  ;;  %s464_s4 = sshll.u32 %s788_s30, 3  ;;  %vm232_vm1 = vcmask 97280   ;;  %v535_v7 = vld [vmem:[%s776_s2] ss:$0 sm:$0xff]  ;;  %v624_v0 = vmov 1.0   ;;  %vm336_vm11 = vcmask 257024  }
  0x16   : > { %s207_s7 = scalar_lea.vmem %s774_s0, %s464_s4  ;;  %s560_s30 = scalar_lea.hbm %s559_s29, 8 }
  0x17   : > { %v238_v3 = vsel %vm236_vm0, %v468_v2, 0  ;;  %v218_v4 = vld [vmem:[%s207_s7] sm:$0xff]  ;;  %v219_v5 = vld [vmem:[%s207_s7 + $0x8] sm:$0xff]  ;;  %p561_p12 = scmp.ne.s32.totalorder %s559_s29, %s560_s30  ;;  %s564_s6 = scalar_lea.hbm %s777_s3, 16 }
  0x18   : > { %247 = vmatpush.bf16.msra.mxu0 %v238_v3  ;;  %v220_v6 = vpack.c.bf16 %v219_v5, %v218_v4  ;;  %p566_p2 = scmp.lt.s32.totalorder %s564_s6, %s560_s30 }
  0x19   : > { %p562_p13 = pnand %p561_p12, %p687_p4 }
  0x1a   : > { %p567_p3 = por %p566_p2, %p565_p1 }
  0x1b   : > { %469 = vmatmul.msk.bf16.vlgmr.msra.gmra.mxu0 %vm232_vm1, %v220_v6  ;;  %p563_p0 = pneg %p562_p13 }
  0x1d   : > { %p568_p5 = pnand %p567_p3, %p563_p0 }
  0x98   : > { %v249_v8 = vpop.f32.mrf.mxu0 }
  0x99   : > { %v715_v9 = vadd.f32 %v535_v7, %v249_v8 }
  0x9b   : > { %v718_v10 = vmul.f32 0.70710677, %v715_v9  ;;  %v254_v5 = vmul.f32 0.5, %v715_v9 }
  0x9d   : > { %v262_v11 = vand.u32 2147483647, %v718_v10  ;;  %vm258_vm10 = vcmp.lt.f32.partialorder %v718_v10, 0.0 }
  0x9e   : > { %v260_v1 = vsel %vm258_vm10, -1.0, %v624_v0 }
  0x9f   : > { %v264_v12 = vmul.f32 0.3275911, %v262_v11  ;;  %v316_v31 = vsub.f32 0.0, %v262_v11 }
  0xa0   : > { %v251_v13 = vpop.f32.mrf.mxu0 }
  0xa1   : > { %v266_v14 = vadd.f32 1.0, %v264_v12  ;;  %v721_v15 = vadd.f32 %v535_v7, %v251_v13  ;;  %v318_v37 = vmul.f32 %v316_v31, %v262_v11 }
  0xa3   : > { %536 = vrcp.f32 %v266_v14  ;;  %v724_v16 = vmul.f32 0.70710677, %v721_v15  ;;  %v279_v23 = vand.u32 2147483648, %v266_v14  ;;  %v277_v25 = vand.u32 2147483647, %v266_v14 }
  0xa4   : > { %vm273_vm3 = vweird.f32 %v266_v14  ;;  %v320_v44 = vmul.f32 1.442695, %v318_v37 }
  0xa5   : > { %v263_v17 = vand.u32 2147483647, %v724_v16  ;;  %v280_v27 = vor.u32 1.1754944e-38, %v279_v23  ;;  %vm278_vm5 = vcmp.eq.f32.partialorder %v277_v25, 8.507059e+37  ;;  %vm259_vm12 = vcmp.lt.f32.partialorder %v724_v16, 0.0 }
  0xa7   : > { %v265_v18 = vmul.f32 0.3275911, %v263_v17  ;;  %v317_v48 = vsub.f32 0.0, %v263_v17 }
  0xa9   : > { %v537_v19 = vpop.eup %536  ;;  %v267_v21 = vadd.f32 1.0, %v265_v18  ;;  %v319_v53 = vmul.f32 %v317_v48, %v263_v17  ;;  %v255_v17 = vmul.f32 0.5, %v721_v15 }
  0xaa   : > { %v269_v20 = vmul.f32 %v537_v19, %v266_v14  ;;  %vm274_vm2 = vweird.f32 %v537_v19  ;;  %v261_v14 = vsel %vm259_vm12, -1.0, %v624_v0 }
  0xab   : > { %538 = vrcp.f32 %v267_v21  ;;  %vm275_vm4 = vmor %vm273_vm3, %vm274_vm2  ;;  %v294_v36 = vand.u32 2147483648, %v267_v21  ;;  %v292_v39 = vand.u32 2147483647, %v267_v21  ;;  %vm288_vm7 = vweird.f32 %v267_v21 }
  0xac   : > { %v270_v22 = vsub.f32 1.0, %v269_v20  ;;  %540 = vpow2.f32 %v320_v44  ;;  %v322_v58 = vmul.f32 1.442695, %v319_v53 }
  0xad   : > { %v295_v43 = vor.u32 1.1754944e-38, %v294_v36  ;;  %vm293_vm9 = vcmp.eq.f32.partialorder %v292_v39, 8.507059e+37 }
  0xae   : > { %v271_v24 = vmul.f32 %v537_v19, %v270_v22  ;;  %542 = vpow2.f32 %v322_v58 }
  0xb0   : > { %v272_v26 = vadd.f32 %v537_v19, %v271_v24 }
  0xb1   : > { %v539_v28 = vpop.eup %538 }
  0xb2   : > { %v276_v29 = vsel %vm275_vm4, %v537_v19, %v272_v26  ;;  %v284_v32 = vmul.f32 %v539_v28, %v267_v21  ;;  %vm289_vm6 = vweird.f32 %v539_v28  ;;  %v541_v59 = vpop.eup %540 }
  0xb3   : > { %v281_v30 = vsel %vm278_vm5, %v280_v27, %v276_v29  ;;  %vm290_vm8 = vmor %vm288_vm7, %vm289_vm6 }
  0xb4   : > { %v298_v33 = vmul.f32 1.0614054, %v281_v30  ;;  %v285_v34 = vsub.f32 1.0, %v284_v32  ;;  %v543_v8 = vpop.eup %542 }
  0xb6   : > { %v300_v35 = vadd.f32 -1.4531521, %v298_v33  ;;  %v286_v38 = vmul.f32 %v539_v28, %v285_v34 }
  0xb8   : > { %v302_v40 = vmul.f32 %v300_v35, %v281_v30  ;;  %v287_v41 = vadd.f32 %v539_v28, %v286_v38 }
  0xba   : > { %v304_v42 = vadd.f32 1.4214138, %v302_v40  ;;  %v291_v45 = vsel %vm290_vm8, %v539_v28, %v287_v41 }
  0xbb   : > { %v296_v47 = vsel %vm293_vm9, %v295_v43, %v291_v45 }
  0xbc   : > { %v306_v46 = vmul.f32 %v304_v42, %v281_v30  ;;  %v299_v49 = vmul.f32 1.0614054, %v296_v47 }
  0xbe   : > { %v308_v50 = vadd.f32 -0.28449672, %v306_v46  ;;  %v301_v51 = vadd.f32 -1.4531521, %v299_v49 }
  0xc0   : > { %v310_v52 = vmul.f32 %v308_v50, %v281_v30  ;;  %v303_v54 = vmul.f32 %v301_v51, %v296_v47 }
  0xc2   : > { %v312_v55 = vadd.f32 0.2548296, %v310_v52  ;;  %v305_v56 = vadd.f32 1.4214138, %v303_v54 }
  0xc4   : > { %v314_v57 = vmul.f32 %v312_v55, %v281_v30  ;;  %v307_v60 = vmul.f32 %v305_v56, %v296_v47 }
  0xc6   : > { %v324_v61 = vmul.f32 %v541_v59, %v314_v57  ;;  %v309_v62 = vadd.f32 -0.28449672, %v307_v60 }
  0xc8   : > { %v326_v63 = vsub.f32 1.0, %v324_v61  ;;  %v311_v2 = vmul.f32 %v309_v62, %v296_v47 }
  0xca   : > { %v328_v3 = vmul.f32 %v326_v63, %v260_v1  ;;  %v313_v4 = vadd.f32 0.2548296, %v311_v2 }
  0xcc   : > { %v330_v6 = vadd.f32 1.0, %v328_v3  ;;  %v315_v7 = vmul.f32 %v313_v4, %v296_v47 }
  0xce   : > { %v332_v11 = vmul.f32 %v330_v6, %v254_v5  ;;  %v325_v10 = vmul.f32 %v543_v8, %v315_v7 }
  0xd0   : > { %v334_v12 = vpack.c.bf16 %v332_v11, %v332_v11  ;;  %v327_v13 = vsub.f32 1.0, %v325_v10 }
  0xd2   : > { %337 = vst.msk [vmem:[%s202_s19] sm:$0xf] %vm336_vm11, %v334_v12  ;;  %v329_v9 = vmul.f32 %v327_v13, %v261_v14 }
  0xd4   : > { %v331_v18 = vadd.f32 1.0, %v329_v9 }
  0xd6   : > { %v333_v16 = vmul.f32 %v331_v18, %v255_v17 }
  0xd8   : > { %v335_v19 = vpack.c.bf16 %v333_v16, %v333_v16 }
  0xda   : > { %338 = vst.msk [vmem:[%s202_s19 + $0x4] sm:$0xf] %vm336_vm11, %v335_v19 }
  0xdb   : > { %571 = shalt.err (!%p568_p5)
}
  0xdc   : > { %s625_s9 = smov 64   ;;  %s626_s10 = smov 4  }
  0xdd   : > { %477 = dma.vmem_to_hbm [thread:$0]  (%p687_p4), %s354_s27, 128, %s356_s28, %s340_s15, %s625_s9, %s625_s9, %s626_s10  }
  0xde PF: > { %p483_p6 = scmp.ge.s32.totalorder %s622_s17, 2  ;;  %s370_s11 = sand.u32 1, %s602_s12  }
  0xdf   : > { %s371_s18 = scalar_lea.sflag [#allocation3], %s370_s11 }
  0xe0   : > { %p480_p7 = pnand %p483_p6, %p694_p8 }
  0xe2   : > { %p481_p9 = pneg %p480_p7 }
  0xe4   : > { %597 = dma.done.wait (%p481_p9), %s371_s18, 128  }
  0xe5   : > { %599 = vsyncadd (%p481_p9), %s371_s18, 4294967168  ;;  %s16_s17 = sadd.s32 1, %s622_s17   ;;  %s780_s12 = smov %s606_s13 }
  0xe6   : > { %p13_p10 = scmp.ge.s32.totalorder %s16_s17, 4   ;;  %s781_s13 = smov %s610_s14 }
  0xe7   : > { %s782_s14 = smov %s700_s25  ;;  %s783_s15 = smov %s618_s16 }
  0xe8   : > { %s784_s16 = smov %s786_s20  ;;  %15 = sbr.rel (!%p13_p10) target bundleno = 4 (0x4), region = 73 }
  0xed   :  { %377 = vsyncpa [#allocation3], 1 }
  0xee   :  { %379 = vsyncpa [#allocation3 + $0x1], 1 }

</bundles_post_ra>
